<compile_context>
chip_gen: v7x
topology: tpu7x:2x2x1
jax: 0.10.0
libtpu: 0.0.40
codegen_flags: <defaults>
</compile_context>

<pallas_src>
import jax
import jax.numpy as jnp
from jax.experimental import pallas as pl
from jax.experimental.pallas import tpu as pltpu


def channel_part_kernel(x_ref, w_ref, b_ref, o_ref, pooled_acc):
    # x_ref:      [nb, C, hw_tile]  batch-block of input, native dtype, HW on lanes
    # w_ref:      [C, Cout]         1x1 conv weight (transposed, BN scale folded in)
    # b_ref:      [1, Cout]         folded BN bias (beta - mean * gamma/sqrt(var+eps))
    # o_ref:      [nb, Cout]        output block (written once, on the last HW step)
    # pooled_acc: [nb, C] f32       running spatial max (VMEM scratch)
    k = pl.program_id(1)

    @pl.when(k == 0)
    def _():
        pooled_acc[...] = jnp.full_like(pooled_acc, -jnp.inf)

    # AdaptiveMaxPool2d(1): max over the spatial (lane) axis of this chunk,
    # in the input's native dtype (max is exact), then accumulate in f32.
    blk_max = jnp.max(x_ref[...], axis=-1).astype(jnp.float32)      # [nb, C]
    pooled_acc[...] = jnp.maximum(pooled_acc[...], blk_max)

    @pl.when(k == pl.num_programs(1) - 1)
    def _():
        # Conv2d 1x1 (bias=False) with BN scale folded into the weight,
        # then BN bias, then Hardswish: z * relu6(z + 3) / 6.
        z = jnp.dot(pooled_acc[...], w_ref[...],
                    preferred_element_type=jnp.float32)             # [nb, Cout]
        z = z + b_ref[...]
        o_ref[...] = (z * jnp.clip(z + 3.0, 0.0, 6.0) * (1.0 / 6.0)
                      ).astype(o_ref.dtype)


def _pick_batch_block(N, max_nb=8):
    """Largest divisor of N that is <= max_nb (keeps blocks exact, no padding)."""
    nb = min(N, max_nb)
    while N % nb != 0:
        nb -= 1
    return nb


def _pick_hw_tile(HW, C, nb, itemsize, budget_bytes=4 << 20):
    """Largest lane-aligned HW tile that divides HW and fits ~budget per block.

    With double buffering this keeps the input pipeline well inside the
    default scoped VMEM on v5e/v6e/v7x.
    """
    full_bytes = nb * C * HW * itemsize
    if full_bytes <= budget_bytes or HW % 128 != 0:
        return HW
    t = max((budget_bytes // max(nb * C * itemsize, 1)) // 128 * 128, 128)
    while t >= 128:
        if HW % t == 0:
            return t
        t -= 128
    return HW


def channel_part_avg(x_nchw, conv_w, bn_gamma, bn_beta, bn_mean, bn_var, eps=1e-5):
    """tactics='Avg' branch: Hardswish(BN(Conv1x1(AdaptiveMaxPool2d(1)(x))))."""
    N, C, H, W = x_nchw.shape
    Cout = conv_w.shape[0]
    HW = H * W

    # Free, contiguous reshape; keep native dtype for the HBM read.
    x = x_nchw.reshape(N, C, HW)

    # Fold BN (eval mode) into the conv weight / bias (tiny, wrapper-side).
    scale_vec = (bn_gamma / jnp.sqrt(bn_var + eps)).astype(jnp.float32)      # [Cout]
    w = conv_w.reshape(Cout, C).astype(jnp.float32)                          # [Cout, C]
    w_scaled_t = jnp.transpose(w * scale_vec[:, None], (1, 0))               # [C, Cout]
    bias = (bn_beta.astype(jnp.float32)
            - bn_mean.astype(jnp.float32) * scale_vec).reshape(1, Cout)      # [1, Cout]

    nb = _pick_batch_block(N)
    hw_tile = _pick_hw_tile(HW, C, nb, jnp.dtype(x.dtype).itemsize)
    grid = (N // nb, pl.cdiv(HW, hw_tile))

    out = pl.pallas_call(
        channel_part_kernel,
        out_shape=jax.ShapeDtypeStruct((N, Cout), jnp.float32),
        grid_spec=pltpu.PrefetchScalarGridSpec(
            num_scalar_prefetch=0,
            grid=grid,
            in_specs=[
                pl.BlockSpec((nb, C, hw_tile), lambda n, k: (n, 0, k)),
                pl.BlockSpec((C, Cout), lambda n, k: (0, 0)),
                pl.BlockSpec((1, Cout), lambda n, k: (0, 0)),
            ],
            out_specs=pl.BlockSpec((nb, Cout), lambda n, k: (n, 0)),
            scratch_shapes=[pltpu.VMEM((nb, C), jnp.float32)],
        ),
        compiler_params=pltpu.CompilerParams(
            dimension_semantics=("parallel", "arbitrary")),
    )(x, w_scaled_t, bias)

    return out.reshape(N, Cout, 1, 1)


def channel_part_avg_ref(x_nchw, conv_w, bn_gamma, bn_beta, bn_mean, bn_var, eps=1e-5):
    """Pure-JAX reference for correctness check."""
    N, C, H, W = x_nchw.shape
    Cout = conv_w.shape[0]
    pooled = jnp.max(x_nchw.reshape(N, C, H * W).astype(jnp.float32), axis=-1)  # [N, C]
    z = pooled @ conv_w.reshape(Cout, C).astype(jnp.float32).T                  # [N, Cout]
    scale = bn_gamma / jnp.sqrt(bn_var + eps)
    z = z * scale + (bn_beta - bn_mean * scale)
    y = z * jnp.clip(z + 3.0, 0.0, 6.0) / 6.0
    return y.reshape(N, Cout, 1, 1)


if __name__ == "__main__":
    # Module config: channel=64, reduction=16 -> Cout=4; batch=2, spatial=16x16.
    N, C, H, W = 2, 64, 16, 16
    reduction = 16
    Cout = C // reduction

    key = jax.random.PRNGKey(0)
    kx, kw = jax.random.split(key)
    x = jax.random.normal(kx, (N, C, H, W), dtype=jnp.float32)

    # Deterministic parameter init (shapes per nn.Conv2d / nn.BatchNorm2d defaults).
    conv_w = jax.random.normal(kw, (Cout, C, 1, 1), dtype=jnp.float32) * 0.1
    bn_gamma = jnp.ones((Cout,), jnp.float32)      # BatchNorm2d weight init
    bn_beta = jnp.zeros((Cout,), jnp.float32)      # BatchNorm2d bias init
    bn_mean = jnp.zeros((Cout,), jnp.float32)      # running_mean init (eval mode)
    bn_var = jnp.ones((Cout,), jnp.float32)        # running_var init (eval mode)

    y = channel_part_avg(x, conv_w, bn_gamma, bn_beta, bn_mean, bn_var)
    y = jax.block_until_ready(y)

    y_ref = channel_part_avg_ref(x, conv_w, bn_gamma, bn_beta, bn_mean, bn_var)
    assert y.shape == (N, Cout, 1, 1)
    assert jnp.allclose(y, y_ref, atol=1e-5, rtol=1e-5), "mismatch vs reference"

    print("KERNEL_OK")
</pallas_src>

<mosaic_0001>
module attributes {stable_mosaic.version = 11 : i64} {
  func.func @channel_part_kernel(%arg0: i32, %arg1: i32, %arg2: memref<2x64x256xf32, #tpu.memory_space<vmem>>, %arg3: memref<64x4xf32, #tpu.memory_space<vmem>>, %arg4: memref<1x4xf32, #tpu.memory_space<vmem>>, %arg5: memref<2x4xf32, #tpu.memory_space<vmem>>, %arg6: memref<2x64xf32, #tpu.memory_space<vmem>>) attributes {dimension_semantics = [#tpu.dimension_semantics<parallel>, #tpu.dimension_semantics<arbitrary>], iteration_bounds = array<i64: 1, 1>, scalar_prefetch = 0 : i64, scratch_operands = 1 : i64, tpu.core_type = #tpu.core_type<tc>, window_params = [{transform_indices = @transform_0, window_bounds = array<i64: 2, 64, 256>}, {pipeline_mode = #tpu.pipeline_mode<synchronous>, transform_indices = @transform_1, window_bounds = array<i64: 64, 4>}, {pipeline_mode = #tpu.pipeline_mode<synchronous>, transform_indices = @transform_2, window_bounds = array<i64: 1, 4>}, {transform_indices = @transform_3, window_bounds = array<i64: 2, 4>}]} {
    %c0_i32 = arith.constant 0 : i32
    %0 = arith.cmpi eq, %arg1, %c0_i32 : i32
    %1 = arith.extui %0 : i1 to i32
    %c0_i32_0 = arith.constant 0 : i32
    %2 = arith.cmpi ne, %1, %c0_i32_0 : i32
    scf.if %2 {
      %cst_9 = arith.constant 0xFF800000 : f32
      %11 = vector.broadcast %cst_9 : f32 to vector<2x64xf32>
      %c0_10 = arith.constant 0 : index
      %c0_11 = arith.constant 0 : index
      %12 = vector.load %arg6[%c0_10, %c0_11] : memref<2x64xf32, #tpu.memory_space<vmem>>, vector<2x64xf32>
      tpu.vector_store %arg6[%c0_10, %c0_11], %11 {strides = array<i32>} : memref<2x64xf32, #tpu.memory_space<vmem>>, vector<2x64xf32>,
    } else {
    }
    %c0 = arith.constant 0 : index
    %c0_1 = arith.constant 0 : index
    %c0_2 = arith.constant 0 : index
    %3 = vector.load %arg2[%c0, %c0_1, %c0_2] : memref<2x64x256xf32, #tpu.memory_space<vmem>>, vector<2x64x256xf32>
    %cst = arith.constant dense<0xFF800000> : vector<2x64xf32>
    %4 = vector.multi_reduction <maximumf>, %3, %cst [2] : vector<2x64x256xf32> to vector<2x64xf32>
    %c0_3 = arith.constant 0 : index
    %c0_4 = arith.constant 0 : index
    %5 = vector.load %arg6[%c0_3, %c0_4] : memref<2x64xf32, #tpu.memory_space<vmem>>, vector<2x64xf32>
    %6 = arith.maximumf %5, %4 : vector<2x64xf32>
    %c0_5 = arith.constant 0 : index
    %c0_6 = arith.constant 0 : index
    %7 = vector.load %arg6[%c0_5, %c0_6] : memref<2x64xf32, #tpu.memory_space<vmem>>, vector<2x64xf32>
    tpu.vector_store %arg6[%c0_5, %c0_6], %6 {strides = array<i32>} : memref<2x64xf32, #tpu.memory_space<vmem>>, vector<2x64xf32>,
    %c0_i32_7 = arith.constant 0 : i32
    %8 = arith.cmpi eq, %arg1, %c0_i32_7 : i32
    %9 = arith.extui %8 : i1 to i32
    %c0_i32_8 = arith.constant 0 : i32
    %10 = arith.cmpi ne, %9, %c0_i32_8 : i32
    scf.if %10 {
      %c0_9 = arith.constant 0 : index
      %c0_10 = arith.constant 0 : index
      %11 = vector.load %arg6[%c0_9, %c0_10] : memref<2x64xf32, #tpu.memory_space<vmem>>, vector<2x64xf32>
      %c0_11 = arith.constant 0 : index
      %c0_12 = arith.constant 0 : index
      %12 = vector.load %arg3[%c0_11, %c0_12] : memref<64x4xf32, #tpu.memory_space<vmem>>, vector<64x4xf32>
      %cst_13 = arith.constant dense<0.000000e+00> : vector<2x4xf32>
      %13 = tpu.matmul %11, %12, %cst_13 {dimension_numbers = #tpu.dot_dimension_numbers<[1], [0], [0], [1], [0, 0, 1, 1], [], []>} : vector<2x64xf32>, vector<64x4xf32>, vector<2x4xf32> -> vector<2x4xf32>
      %c0_14 = arith.constant 0 : index
      %c0_15 = arith.constant 0 : index
      %14 = vector.load %arg4[%c0_14, %c0_15] : memref<1x4xf32, #tpu.memory_space<vmem>>, vector<1x4xf32>
      %15 = vector.broadcast %14 : vector<1x4xf32> to vector<2x4xf32>
      %16 = arith.addf %13, %15 : vector<2x4xf32>
      %cst_16 = arith.constant 3.000000e+00 : f32
      %17 = vector.broadcast %cst_16 : f32 to vector<2x4xf32>
      %18 = arith.addf %16, %17 : vector<2x4xf32>
      %cst_17 = arith.constant 0.000000e+00 : f32
      %cst_18 = arith.constant 6.000000e+00 : f32
      %19 = vector.broadcast %cst_17 : f32 to vector<2x4xf32>
      %20 = arith.maximumf %19, %18 : vector<2x4xf32>
      %21 = vector.broadcast %cst_18 : f32 to vector<2x4xf32>
      %22 = arith.minimumf %21, %20 : vector<2x4xf32>
      %23 = arith.mulf %16, %22 : vector<2x4xf32>
      %cst_19 = arith.constant 0.166666672 : f32
      %24 = vector.broadcast %cst_19 : f32 to vector<2x4xf32>
      %25 = arith.mulf %23, %24 : vector<2x4xf32>
      %c0_20 = arith.constant 0 : index
      %c0_21 = arith.constant 0 : index
      %26 = vector.load %arg5[%c0_20, %c0_21] : memref<2x4xf32, #tpu.memory_space<vmem>>, vector<2x4xf32>
      tpu.vector_store %arg5[%c0_20, %c0_21], %25 {strides = array<i32>} : memref<2x4xf32, #tpu.memory_space<vmem>>, vector<2x4xf32>,
    } else {
    }
    return
  }
  func.func @transform_0(%arg0: i32, %arg1: i32) -> (i32, i32, i32) {
    %c0_i32 = arith.constant 0 : i32
    %c0_i32_0 = arith.constant 0 : i32
    return %arg0, %c0_i32, %arg1 : i32, i32, i32
  }
  func.func @transform_1(%arg0: i32, %arg1: i32) -> (i32, i32) {
    %c0_i32 = arith.constant 0 : i32
    %c0_i32_0 = arith.constant 0 : i32
    %c0_i32_1 = arith.constant 0 : i32
    return %c0_i32, %c0_i32_0 : i32, i32
  }
  func.func @transform_2(%arg0: i32, %arg1: i32) -> (i32, i32) {
    %c0_i32 = arith.constant 0 : i32
    %c0_i32_0 = arith.constant 0 : i32
    %c0_i32_1 = arith.constant 0 : i32
    return %c0_i32, %c0_i32_0 : i32, i32
  }
  func.func @transform_3(%arg0: i32, %arg1: i32) -> (i32, i32) {
    %c0_i32 = arith.constant 0 : i32
    %c0_i32_0 = arith.constant 0 : i32
    return %arg0, %c0_i32 : i32, i32
  }
}

</mosaic_0001>

<bundles_post_ra>
// kernel: tpu_custom_call.1
= control target key start
LH: loop header
LB: loop body
LE: loop exit
PB: predicated region body
PF: predicated region fallthrough
CT: control target
= control target key end

     0   :  { %8 = vsyncpa [#allocation4], 0  ;;  %s536_s0 = inlined_call_operand.hbm [shape: f32[2,64,256], index: 0, kind: input, shape index: {}]   ;;  %s537_s1 = inlined_call_operand.vmem [shape: f32[64,4], index: 1, kind: input, shape index: {}]   ;;  %s538_s2 = inlined_call_operand.vmem [shape: f32[1,4], index: 2, kind: input, shape index: {}]   ;;  %s539_s3 = inlined_call_operand.hbm [shape: f32[2,4], index: 3, kind: output, shape index: {}]  }
   0x1   :  { %9 = vsyncpa [#allocation5], 0  ;;  %s445_s12 = smov [#allocation3]   ;;  %s397_s16 = scalar_lea.hbm %s536_s0, 4096 }
   0x2   :  { %s15_s13 = sshll.u32 %s445_s12, 4  ;;  %p398_p0 = scmp.ne.s32.totalorder %s536_s0, %s397_s16  ;;  %s16_s13 = int_to_ptr.vmem [resolvable:$true] %s15_s13 }
   0x3   :  { %p401_p1 = scmp.lt.u32.totalorder %s397_s16, %s536_s0 }
   0x5   :  { %p403_p2 = pnand %p401_p1, %p398_p0 }
   0x7   :  { %406 = shalt.err (!%p403_p2)
}
   0x8   :  { %s407_s21 = scalar_lea.vmem %s16_s13, 4096  ;;  %p412_p4 = scmp.lt.s32.totalorder %s16_s13, %s16_s13 }
   0x9   :  { %p408_p3 = scmp.ne.s32.totalorder %s16_s13, %s407_s21  ;;  %p413_p5 = scmp.lt.s32.totalorder %s407_s21, %s407_s21 }
   0xb   :  { %p414_p6 = por %p413_p5, %p412_p4 }
   0xd   :  { %p415_p7 = pnand %p414_p6, %p408_p3 }
   0xf   :  { %418 = shalt.err (!%p415_p7)
}
  0x10   :  { %s446_s22 = smov 256   ;;  %s447_s23 = smov 16  }
  0x11   :  { %21 = dma.hbm_to_vmem [thread:$0]  %s536_s0, 4096, %s16_s13, [#allocation4], %s446_s22, %s446_s22, %s447_s23  }
  0x12   :  { %441 = dma.done.wait [#allocation4], 4096  }
  0x13   :  { %442 = vsyncadd [#allocation4], 4294963200  ;;  %v51_v0 = vld [vmem:[#allocation3 + $0x80] sm:$0xff]  ;;  %v52_v1 = vld [vmem:[#allocation3 + $0x88] sm:$0xff]  ;;  %vm33_vm0 = vcmask 517120   ;;  %v448_v50 = vmov -inf  }
  0x14   :  { %v35_v2 = vld [vmem:[#allocation3] sm:$0xff]  ;;  %v91_v3 = vmax.f32 %v51_v0, %v52_v1  ;;  %v36_v4 = vld [vmem:[#allocation3 + $0x8] sm:$0xff]  ;;  %v53_v5 = vld [vmem:[#allocation3 + $0x90] sm:$0xff]  ;;  %34 = vst.msk [vmem:[#allocation2] sm:$0x3] %vm33_vm0, %v448_v50  ;;  %v449_v52 = vmov 0.0|0.0  }
  0x15   :  { %v54_v6 = vld [vmem:[#allocation3 + $0x98] sm:$0xff]  ;;  %v67_v7 = vmax.f32 %v35_v2, %v36_v4  ;;  %v37_v8 = vld [vmem:[#allocation3 + $0x10] sm:$0xff]  ;;  %v55_v12 = vld [vmem:[#allocation3 + $0xa0] sm:$0xff]  ;;  %377 = vmatprep.subr.bf16.mxu0 %v449_v52  ;;  %vm450_vm1 = vmmov 0   ;;  %v451_v62 = vmov 0.0   ;;  %vm143_vm2 = vcmask 130112  }
  0x16   :  { %v38_v9 = vld [vmem:[#allocation3 + $0x18] sm:$0xff]  ;;  %92 = vmax.xlane.f32.xlu1 %v91_v3  ;;  %v94_v10 = vmax.f32 %v53_v5, %v54_v6  ;;  %v56_v13 = vld [vmem:[#allocation3 + $0xa8] sm:$0xff]  ;;  %v39_v14 = vld [vmem:[#allocation3 + $0x20] sm:$0xff]  ;;  %374 = vmatprep.mubr.msk.f32.mxu0 %vm450_vm1, %v451_v62  ;;  %v132_v3 = vlaneseq  ;;  %vm150_vm3 = vcmask 195712   ;;  %vm157_vm4 = vcmask 261312   ;;  %s452_s15 = smov [#allocation6]  }
  0x17   :  { %68 = vmax.xlane.f32.xlu0 %v67_v7  ;;  %v70_v11 = vmax.f32 %v37_v8, %v38_v9  ;;  %v40_v15 = vld [vmem:[#allocation3 + $0x28] sm:$0xff]  ;;  %v97_v16 = vmax.f32 %v55_v12, %v56_v13  ;;  %v57_v18 = vld [vmem:[#allocation3 + $0xb0] sm:$0xff]  ;;  %v58_v19 = vld [vmem:[#allocation3 + $0xb8] sm:$0xff]  ;;  %vm164_vm5 = vcmask 326912   ;;  %vm171_vm6 = vcmask 392512   ;;  %s338_s16 = sshll.u32 %s452_s15, 4  ;;  %s339_s16 = int_to_ptr.vmem [resolvable:$true] %s338_s16 }
  0x18   :  { %v73_v17 = vmax.f32 %v39_v14, %v40_v15  ;;  %v41_v20 = vld [vmem:[#allocation3 + $0x30] sm:$0xff]  ;;  %v42_v21 = vld [vmem:[#allocation3 + $0x38] sm:$0xff]  ;;  %v100_v22 = vmax.f32 %v57_v18, %v58_v19  ;;  %v59_v24 = vld [vmem:[#allocation3 + $0xc0] sm:$0xff]  ;;  %v133_v6 = vand.u32 127, %v132_v3  ;;  %vm178_vm7 = vcmask 458112   ;;  %s419_s17 = scalar_lea.vmem %s339_s16, 32  ;;  %p424_p9 = scmp.lt.s32.totalorder %s339_s16, %s339_s16 }
  0x19   :  { %v76_v23 = vmax.f32 %v41_v20, %v42_v21  ;;  %v60_v25 = vld [vmem:[#allocation3 + $0xc8] sm:$0xff]  ;;  %v43_v26 = vld [vmem:[#allocation3 + $0x40] sm:$0xff]  ;;  %v61_v30 = vld [vmem:[#allocation3 + $0xd0] sm:$0xff]  ;;  %vm185_vm8 = vcmask 523712   ;;  %vm226_vm9 = vcmask 1041409   ;;  %vm251_vm10 = vcmask 523264   ;;  %p420_p8 = scmp.ne.s32.totalorder %s339_s16, %s419_s17  ;;  %p425_p10 = scmp.lt.s32.totalorder %s419_s17, %s419_s17 }
  0x1a   :  { %95 = vmax.xlane.f32.xlu1 %v94_v10  ;;  %v44_v27 = vld [vmem:[#allocation3 + $0x48] sm:$0xff]  ;;  %v103_v28 = vmax.f32 %v59_v24, %v60_v25  ;;  %v62_v31 = vld [vmem:[#allocation3 + $0xd8] sm:$0xff]  ;;  %v45_v32 = vld [vmem:[#allocation3 + $0x50] sm:$0xff]  ;;  %v138_v8 = vadd.s32 4294967288, %v133_v6  ;;  %v145_v10 = vadd.s32 4294967280, %v133_v6  ;;  %v152_v12 = vadd.s32 4294967272, %v133_v6 }
  0x1b   :  { %71 = vmax.xlane.f32.xlu0 %v70_v11  ;;  %v79_v29 = vmax.f32 %v43_v26, %v44_v27  ;;  %v46_v33 = vld [vmem:[#allocation3 + $0x58] sm:$0xff]  ;;  %v106_v34 = vmax.f32 %v61_v30, %v62_v31  ;;  %v63_v36 = vld [vmem:[#allocation3 + $0xe0] sm:$0xff]  ;;  %v64_v37 = vld [vmem:[#allocation3 + $0xe8] sm:$0xff]  ;;  %v135_v11 = vshrl.u32 %v132_v3, 7  ;;  %v159_v13 = vadd.s32 4294967264, %v133_v6  ;;  %p426_p11 = por %p425_p10, %p424_p9 }
  0x1c   :  { %v82_v35 = vmax.f32 %v45_v32, %v46_v33  ;;  %v47_v38 = vld [vmem:[#allocation3 + $0x60] sm:$0xff]  ;;  %v48_v39 = vld [vmem:[#allocation3 + $0x68] sm:$0xff]  ;;  %v109_v40 = vmax.f32 %v63_v36, %v64_v37  ;;  %v65_v42 = vld [vmem:[#allocation3 + $0xf0] sm:$0xff]  ;;  %v173_v19 = vadd.s32 4294967248, %v133_v6  ;;  %v180_v27 = vadd.s32 4294967240, %v133_v6 }
  0x1d   :  { %v85_v41 = vmax.f32 %v47_v38, %v48_v39  ;;  %v66_v43 = vld [vmem:[#allocation3 + $0xf8] sm:$0xff]  ;;  %v49_v44 = vld [vmem:[#allocation3 + $0x70] sm:$0xff]  ;;  %v237_v49 = vld [vmem:[%s537_s1 + $0x8] sm:$0xff]  ;;  %v141_v15 = vsub.s32 %v138_v8, %v135_v11  ;;  %v148_v18 = vsub.s32 %v145_v10, %v135_v11  ;;  %v136_v20 = vsub.s32 %v133_v6, %v135_v11  ;;  %p427_p12 = pnand %p426_p11, %p420_p8 }
  0x1e   :  { %98 = vmax.xlane.f32.xlu1 %v97_v16  ;;  %v50_v45 = vld [vmem:[#allocation3 + $0x78] sm:$0xff]  ;;  %v112_v46 = vmax.f32 %v65_v42, %v66_v43  ;;  %v238_v53 = vld [vmem:[%s537_s1 + $0x10] sm:$0xff]  ;;  %v241_v57 = vld [vmem:[%s537_s1 + $0x28] sm:$0xff]  ;;  %v155_v21 = vsub.s32 %v152_v12, %v135_v11  ;;  %v176_v30 = vsub.s32 %v173_v19, %v135_v11  ;;  %v183_v42 = vsub.s32 %v180_v27, %v135_v11 }
  0x1f   :  { %74 = vmax.xlane.f32.xlu0 %v73_v17  ;;  %v88_v47 = vmax.f32 %v49_v44, %v50_v45  ;;  %v236_v48 = vld [vmem:[%s537_s1] sm:$0xff]  ;;  %v239_v54 = vld [vmem:[%s537_s1 + $0x18] sm:$0xff]  ;;  %v242_v59 = vld [vmem:[%s537_s1 + $0x30] sm:$0xff]  ;;  %v166_v17 = vadd.s32 4294967256, %v133_v6  ;;  %vm330_vm11 = vcmask 25600  }
  0x20   :  { %v378_v51 = vpack.c.bf16 %v237_v49, %v236_v48  ;;  %v381_v55 = vpack.c.bf16 %v239_v54, %v238_v53  ;;  %v240_v56 = vld [vmem:[%s537_s1 + $0x20] sm:$0xff]  ;;  %v243_v60 = vld [vmem:[%s537_s1 + $0x38] sm:$0xff] }
  0x21   :  { %v384_v58 = vpack.c.bf16 %v241_v57, %v240_v56  ;;  %v387_v61 = vpack.c.bf16 %v243_v60, %v242_v59  ;;  %v169_v25 = vsub.s32 %v166_v17, %v135_v11  ;;  %v115_v62 = vld [vmem:[#allocation2] sm:$0x3] }
  0x22   :  { %101 = vmax.xlane.f32.xlu1 %v100_v22  ;;  %379 = vmatpush3.bf16.msra.mxu0 %v378_v51  ;;  %v162_v22 = vsub.s32 %v159_v13, %v135_v11  ;;  %v347_v3 = vld [vmem:[%s538_s2] ss:$0 sm:$0xff] }
  0x23   :  { %77 = vmax.xlane.f32.xlu0 %v76_v23  ;;  %380 = vmatprep.subr.bf16.mxu0 %v449_v52 }
  0x26   :  { %104 = vmax.xlane.f32.xlu1 %v103_v28  ;;  %382 = vmatpush3.bf16.msra.mxu0 %v381_v55 }
  0x27   :  { %80 = vmax.xlane.f32.xlu0 %v79_v29  ;;  %383 = vmatprep.subr.bf16.mxu0 %v449_v52 }
  0x2a   :  { %107 = vmax.xlane.f32.xlu1 %v106_v34  ;;  %385 = vmatpush3.bf16.msra.mxu0 %v384_v58 }
  0x2b   :  { %83 = vmax.xlane.f32.xlu0 %v82_v35  ;;  %386 = vmatprep.subr.bf16.mxu0 %v449_v52 }
  0x2e   :  { %110 = vmax.xlane.f32.xlu1 %v109_v40  ;;  %388 = vmatpush3.bf16.msra.mxu0 %v387_v61 }
  0x2f   :  { %86 = vmax.xlane.f32.xlu0 %v85_v41 }
  0x32   :  { %113 = vmax.xlane.f32.xlu1 %v112_v46 }
  0x33   :  { %89 = vmax.xlane.f32.xlu0 %v88_v47 }
  0xa3   :  { %v93_v63 = vpop.xlane.xlu1 %92 }
  0xa4   :  { %v69_v0 = vpop.xlane.xlu0 %68  ;;  %v190_v31 = vrot.slane %v93_v63, %v136_v20 }
  0xa5   :  { %v137_v34 = vrot.slane %v69_v0, %v136_v20 }
  0xa7   :  { %v96_v1 = vpop.xlane.xlu1 %95 }
  0xa8   :  { %v72_v2 = vpop.xlane.xlu0 %71  ;;  %v194_v24 = vrot.slane %v96_v1, %v141_v15 }
  0xa9   :  { %v142_v28 = vrot.slane %v72_v2, %v141_v15 }
  0xaa   :  { %v195_v38 = vsel %vm143_vm2, %v194_v24, %v190_v31 }
  0xab   :  { %v99_v4 = vpop.xlane.xlu1 %98  ;;  %v144_v43 = vsel %vm143_vm2, %v142_v28, %v137_v34 }
  0xac   :  { %v75_v5 = vpop.xlane.xlu0 %74  ;;  %v199_v29 = vrot.slane %v99_v4, %v148_v18 }
  0xad   :  { %v149_v32 = vrot.slane %v75_v5, %v148_v18 }
  0xae   :  { %v200_v44 = vsel %vm150_vm3, %v199_v29, %v195_v38 }
  0xaf   :  { %v102_v7 = vpop.xlane.xlu1 %101  ;;  %v151_v47 = vsel %vm150_vm3, %v149_v32, %v144_v43 }
  0xb0   :  { %v78_v9 = vpop.xlane.xlu0 %77  ;;  %v204_v33 = vrot.slane %v102_v7, %v155_v21 }
  0xb1   :  { %v156_v35 = vrot.slane %v78_v9, %v155_v21 }
  0xb2   :  { %v205_v48 = vsel %vm157_vm4, %v204_v33, %v200_v44 }
  0xb3   :  { %v105_v14 = vpop.xlane.xlu1 %104  ;;  %v158_v50 = vsel %vm157_vm4, %v156_v35, %v151_v47 }
  0xb4   :  { %v81_v16 = vpop.xlane.xlu0 %80  ;;  %v209_v36 = vrot.slane %v105_v14, %v162_v22 }
  0xb5   :  { %v163_v39 = vrot.slane %v81_v16, %v162_v22 }
  0xb6   :  { %v210_v51 = vsel %vm164_vm5, %v209_v36, %v205_v48 }
  0xb7   :  { %v108_v23 = vpop.xlane.xlu1 %107  ;;  %v165_v53 = vsel %vm164_vm5, %v163_v39, %v158_v50 }
  0xb8   :  { %v84_v26 = vpop.xlane.xlu0 %83  ;;  %v214_v40 = vrot.slane %v108_v23, %v169_v25 }
  0xb9   :  { %v170_v45 = vrot.slane %v84_v26, %v169_v25 }
  0xba   :  { %v215_v54 = vsel %vm171_vm6, %v214_v40, %v210_v51 }
  0xbb   :  { %v111_v37 = vpop.xlane.xlu1 %110  ;;  %v172_v57 = vsel %vm171_vm6, %v170_v45, %v165_v53 }
  0xbc   :  { %v87_v41 = vpop.xlane.xlu0 %86  ;;  %v219_v46 = vrot.slane %v111_v37, %v176_v30 }
  0xbd   :  { %v177_v49 = vrot.slane %v87_v41, %v176_v30 }
  0xbe   :  { %v220_v58 = vsel %vm178_vm7, %v219_v46, %v215_v54 }
  0xbf   :  { %v114_v52 = vpop.xlane.xlu1 %113  ;;  %v179_v60 = vsel %vm178_vm7, %v177_v49, %v172_v57 }
  0xc0   :  { %v224_v55 = vrot.slane %v114_v52, %v183_v42  ;;  %v90_v56 = vpop.xlane.xlu0 %89 }
  0xc1   :  { %v184_v59 = vrot.slane %v90_v56, %v183_v42 }
  0xc2   :  { %v225_v61 = vsel %vm185_vm8, %v224_v55, %v220_v58 }
  0xc3   :  { %v186_v63 = vsel %vm185_vm8, %v184_v59, %v179_v60 }
  0xc4   :  { %v227_v0 = vsel %vm226_vm9, %v225_v61, %v186_v63 }
  0xc5   :  { %v229_v1 = vmax.f32 %v115_v62, %v227_v0 }
  0xc7   :  { %231 = vst.msk [vmem:[#allocation2] sm:$0x3] %vm33_vm0, %v229_v1 }
  0xce   :  { %v235_v2 = vld [vmem:[#allocation2] sm:$0x3] }
  0xcf   :  { %375 = vmatmul.mubr.msk.f32.vlgmr.msra.gmra.mrb[0].mxu0 %vm251_vm10, %v235_v2 }
 0x1a2   :  { %v321_v4 = vpop.f32.mrb[0].mxu0 }
 0x1a3   :  { %v322_v5 = vadd.f32 %v347_v3, %v321_v4  ;;  %v376_v6 = vpop.f32.mrb[1].mxu0 }
 0x1a5   :  { %v325_v7 = vadd.f32 3.0, %v322_v5 }
 0x1a7   :  { %v326_v8 = vmax.f32 %v325_v7, 0.0 }
 0x1a9   :  { %v327_v9 = vmin.f32 %v326_v8, 6.0 }
 0x1ab   :  { %v328_v10 = vmul.f32 %v327_v9, %v322_v5 }
 0x1ad   :  { %v329_v11 = vmul.f32 0.16666667, %v328_v10 }
 0x1af   :  { %331 = vst.msk [vmem:[#allocation6] sm:$0x3] %vm330_vm11, %v329_v11 }
 0x1b0   :  { %430 = shalt.err (!%p427_p12)
}
 0x1b1   :  { %s431_s19 = scalar_lea.hbm %s539_s3, 32 }
 0x1b2   :  { %p432_p13 = scmp.ne.s32.totalorder %s539_s3, %s431_s19  ;;  %p435_p0 = scmp.lt.u32.totalorder %s431_s19, %s539_s3 }
 0x1b4   :  { %p437_p1 = pnand %p435_p0, %p432_p13 }
 0x1b6   :  { %440 = shalt.err (!%p437_p1)
}
 0x1b7   :  { %341 = dma.vmem_to_hbm [thread:$0]  %s339_s16, 32, %s539_s3, [#allocation5]  }
 0x1b8   :  { %443 = dma.done.wait [#allocation5], 32  }
 0x1b9   :  { %444 = vsyncadd [#allocation5], 4294967264 }
 0x1ba   :  { %345 = vsyncpa [#allocation4], 1 }
 0x1bb   :  { %346 = vsyncpa [#allocation5], 1 }

</bundles_post_ra>
